<compile_context>
chip_gen: v7x
topology: tpu7x:2x2x1
jax: 0.10.0
libtpu: 0.0.40
codegen_flags: <defaults>
</compile_context>

<pallas_src>
import jax
import jax.numpy as jnp
from jax.experimental import pallas as pl
from jax.experimental.pallas import tpu as pltpu


def _adaln_kernel(emb_ref, w_ref, b_ref, out_ref):
    # SiLU in f32 (v5e's VPU/EUP have no bf16 datapath).
    x = emb_ref[...].astype(jnp.float32)
    x = x * jax.nn.sigmoid(x)
    # Match the weight dtype for the MXU: bf16 x bf16 -> f32 accumulate runs
    # at full MXU rate; f32 weights keep the f32 path (no extra upcast of W).
    x = x.astype(w_ref.dtype)
    y = jnp.dot(x, w_ref[...], preferred_element_type=jnp.float32)
    y = y + b_ref[...].astype(jnp.float32)
    out_ref[...] = y.astype(out_ref.dtype)


def _round_up(x, m):
    return ((x + m - 1) // m) * m


def _choose_tiles(B, C, O, w_bytes, out_bytes, budget_bytes=16 << 20):
    """Pick (TM, TN).

    TN is a lane-aligned (multiple-of-128, or full-width if small) output tile
    sized so the double-buffered working set stays inside a conservative VMEM
    budget -> pipelines cleanly on v5e/v6e and on v7x's 64 MiB VMEM.
    """
    TM = B if B <= 512 else 256  # keep whole batch unless it is huge

    def need(tn):
        return (2 * C * tn * w_bytes        # double-buffered weight tile
                + 2 * TM * tn * out_bytes   # double-buffered output tile
                + 2 * tn * 4                # bias tile
                + 2 * TM * C * 4)           # emb tile + f32 SiLU temp

    if O <= 512 and need(O) <= budget_bytes:
        return TM, O                        # tiny case: one full-width tile
    tn = min(1024, _round_up(O, 128))
    while tn > 128 and need(tn) > budget_bytes:
        tn -= 128
    return TM, tn


def adaln_modulation(emb, weight_t, bias, n_mods):
    """emb: (B, C); weight_t: (C, n_mods*C); bias: (n_mods*C,).

    Returns a tuple of n_mods arrays, each (B, C) — same semantics as
    proj(silu(emb)).chunk(n_mods, dim=-1).
    """
    B, C = emb.shape
    O = weight_t.shape[1]
    assert O == n_mods * C and bias.shape == (O,)

    TM, TN = _choose_tiles(B, C, O,
                           w_bytes=weight_t.dtype.itemsize,
                           out_bytes=emb.dtype.itemsize)
    grid = (pl.cdiv(B, TM), pl.cdiv(O, TN))

    cost = pl.CostEstimate(
        flops=2 * B * C * O,
        transcendentals=B * C,  # one sigmoid per input element
        bytes_accessed=(emb.size * emb.dtype.itemsize
                        + weight_t.size * weight_t.dtype.itemsize
                        + bias.size * bias.dtype.itemsize
                        + B * O * emb.dtype.itemsize),
    )

    out = pl.pallas_call(
        _adaln_kernel,
        out_shape=jax.ShapeDtypeStruct((B, O), emb.dtype),
        grid=grid,
        in_specs=[
            # emb tile: constant over the inner (N) axis -> stays resident.
            # SiLU is recomputed per N tile (cheap; keeps both axes parallel-
            # safe for v7x megacore instead of a j==0-gated scratch).
            pl.BlockSpec((TM, C), lambda i, j: (i, 0)),
            # weight streamed in N tiles -> double-buffered HBM DMA.
            pl.BlockSpec((C, TN), lambda i, j: (0, j)),
            # bias as a (1, TN) row.
            pl.BlockSpec((1, TN), lambda i, j: (0, j)),
        ],
        out_specs=pl.BlockSpec((TM, TN), lambda i, j: (i, j)),
        compiler_params=pltpu.CompilerParams(
            dimension_semantics=("parallel", "parallel"),
            vmem_limit_bytes=48 * 1024 * 1024,  # headroom, still < v7x 64 MiB
        ),
        cost_estimate=cost,
    )(emb, weight_t, bias.reshape(1, O))

    # chunk(n_mods, dim=-1): plain slicing glue.
    # TODO(synk): for large C a 3-D (n_mods, B, C) out_spec would avoid these
    # strided chunk copies entirely.
    return tuple(out[:, i * C:(i + 1) * C] for i in range(n_mods))


def _reference(emb, weight_t, bias, n_mods):
    # Mirrors the kernel's dtype flow exactly.
    x = emb.astype(jnp.float32)
    x = x * jax.nn.sigmoid(x)
    x = x.astype(weight_t.dtype)
    y = jnp.dot(x, weight_t, preferred_element_type=jnp.float32)
    y = y + bias.astype(jnp.float32)
    y = y.astype(emb.dtype)
    C = emb.shape[-1]
    return tuple(y[:, i * C:(i + 1) * C] for i in range(n_mods))


if __name__ == "__main__":
    B, C, n_mods = 8, 32, 3

    key = jax.random.PRNGKey(0)
    k_emb, k_w, k_b = jax.random.split(key, 3)
    emb = jax.random.normal(k_emb, (B, C), dtype=jnp.float32)

    # Parameters exactly as the module's __init__: zero weight, zero bias.
    # (proj.weight is (n_mods*C, C) in PyTorch; we store its transpose.)
    weight_t = jnp.zeros((C, n_mods * C), dtype=jnp.float32)
    bias = jnp.zeros((n_mods * C,), dtype=jnp.float32)

    outs = adaln_modulation(emb, weight_t, bias, n_mods)
    outs = jax.block_until_ready(outs)
    assert len(outs) == n_mods and all(o.shape == (B, C) for o in outs)
    # With zero-initialized proj, every modulation chunk must be exactly zero.
    assert all(bool(jnp.all(o == 0)) for o in outs)

    # Correctness with deterministic non-zero params (f32 path).
    w_nz = jax.random.normal(k_w, (C, n_mods * C), dtype=jnp.float32) * 0.02
    b_nz = jax.random.normal(k_b, (n_mods * C,), dtype=jnp.float32) * 0.02
    got = jax.block_until_ready(adaln_modulation(emb, w_nz, b_nz, n_mods))
    want = _reference(emb, w_nz, b_nz, n_mods)
    for g, w in zip(got, want):
        assert jnp.allclose(g, w, atol=1e-5, rtol=1e-5)

    # bf16 weight path (full-rate MXU, f32 accumulation) — loose tolerance.
    emb_bf = emb.astype(jnp.bfloat16)
    w_bf = w_nz.astype(jnp.bfloat16)
    b_bf = b_nz.astype(jnp.bfloat16)
    got_bf = jax.block_until_ready(adaln_modulation(emb_bf, w_bf, b_bf, n_mods))
    want_bf = _reference(emb_bf, w_bf, b_bf, n_mods)
    for g, w in zip(got_bf, want_bf):
        assert jnp.allclose(g.astype(jnp.float32), w.astype(jnp.float32),
                            atol=2e-2, rtol=2e-2)

    print("KERNEL_OK")
</pallas_src>

<mosaic_0001>
module attributes {stable_mosaic.version = 11 : i64} {
  func.func @_adaln_kernel(%arg0: i32, %arg1: i32, %arg2: memref<8x32xf32, #tpu.memory_space<vmem>>, %arg3: memref<32x96xf32, #tpu.memory_space<vmem>>, %arg4: memref<1x96xf32, #tpu.memory_space<vmem>>, %arg5: memref<8x96xf32, #tpu.memory_space<vmem>>) attributes {dimension_semantics = [#tpu.dimension_semantics<parallel>, #tpu.dimension_semantics<parallel>], iteration_bounds = array<i64: 1, 1>, scalar_prefetch = 0 : i64, scratch_operands = 0 : i64, tpu.core_type = #tpu.core_type<tc>, window_params = [{transform_indices = @transform_0, window_bounds = array<i64: 8, 32>}, {transform_indices = @transform_1, window_bounds = array<i64: 32, 96>}, {transform_indices = @transform_2, window_bounds = array<i64: 1, 96>}, {transform_indices = @transform_3, window_bounds = array<i64: 8, 96>}]} {
    %c0 = arith.constant 0 : index
    %c0_0 = arith.constant 0 : index
    %0 = vector.load %arg2[%c0, %c0_0] : memref<8x32xf32, #tpu.memory_space<vmem>>, vector<8x32xf32>
    %1 = arith.negf %0 : vector<8x32xf32>
    %2 = math.exp %1 : vector<8x32xf32>
    %cst = arith.constant 1.000000e+00 : f32
    %3 = vector.broadcast %cst : f32 to vector<8x32xf32>
    %4 = arith.addf %3, %2 : vector<8x32xf32>
    %5 = arith.divf %3, %4 : vector<8x32xf32>
    %6 = arith.mulf %0, %5 : vector<8x32xf32>
    %c0_1 = arith.constant 0 : index
    %c0_2 = arith.constant 0 : index
    %7 = vector.load %arg3[%c0_1, %c0_2] : memref<32x96xf32, #tpu.memory_space<vmem>>, vector<32x96xf32>
    %cst_3 = arith.constant dense<0.000000e+00> : vector<8x96xf32>
    %8 = tpu.matmul %6, %7, %cst_3 {dimension_numbers = #tpu.dot_dimension_numbers<[1], [0], [0], [1], [0, 0, 1, 1], [], []>} : vector<8x32xf32>, vector<32x96xf32>, vector<8x96xf32> -> vector<8x96xf32>
    %c0_4 = arith.constant 0 : index
    %c0_5 = arith.constant 0 : index
    %9 = vector.load %arg4[%c0_4, %c0_5] : memref<1x96xf32, #tpu.memory_space<vmem>>, vector<1x96xf32>
    %10 = vector.broadcast %9 : vector<1x96xf32> to vector<8x96xf32>
    %11 = arith.addf %8, %10 : vector<8x96xf32>
    %c0_6 = arith.constant 0 : index
    %c0_7 = arith.constant 0 : index
    %12 = vector.load %arg5[%c0_6, %c0_7] : memref<8x96xf32, #tpu.memory_space<vmem>>, vector<8x96xf32>
    tpu.vector_store %arg5[%c0_6, %c0_7], %11 {strides = array<i32>} : memref<8x96xf32, #tpu.memory_space<vmem>>, vector<8x96xf32>,
    return
  }
  func.func @transform_0(%arg0: i32, %arg1: i32) -> (i32, i32) {
    %c0_i32 = arith.constant 0 : i32
    %c0_i32_0 = arith.constant 0 : i32
    return %arg0, %c0_i32 : i32, i32
  }
  func.func @transform_1(%arg0: i32, %arg1: i32) -> (i32, i32) {
    %c0_i32 = arith.constant 0 : i32
    %c0_i32_0 = arith.constant 0 : i32
    return %c0_i32, %arg1 : i32, i32
  }
  func.func @transform_2(%arg0: i32, %arg1: i32) -> (i32, i32) {
    %c0_i32 = arith.constant 0 : i32
    %c0_i32_0 = arith.constant 0 : i32
    return %c0_i32, %arg1 : i32, i32
  }
  func.func @transform_3(%arg0: i32, %arg1: i32) -> (i32, i32) {
    %c0_i32 = arith.constant 0 : i32
    return %arg0, %arg1 : i32, i32
  }
}

</mosaic_0001>

<bundles_post_ra>
// kernel: tpu_custom_call.1
= control target key start
LH: loop header
LB: loop body
LE: loop exit
PB: predicated region body
PF: predicated region fallthrough
CT: control target
= control target key end

     0   :  { %8 = vsyncpa [#allocation3], 0  ;;  %s335_s0 = inlined_call_operand.hbm [shape: f32[8,32], index: 0, kind: input, shape index: {}]   ;;  %s336_s1 = inlined_call_operand.hbm [shape: f32[32,96], index: 1, kind: input, shape index: {}]   ;;  %s337_s2 = inlined_call_operand.vmem [shape: f32[1,96], index: 2, kind: input, shape index: {}]   ;;  %s338_s3 = inlined_call_operand.hbm [shape: f32[8,96], index: 3, kind: output, shape index: {}]  }
   0x1   :  { %9 = vsyncpa [#allocation6], 0 }
   0x2   :  { %10 = vsyncpa [#allocation4], 0  ;;  %s261_s12 = smov [#allocation2]   ;;  %s262_s14 = smov [#allocation5]  }
   0x3   :  { %s17_s13 = sshll.u32 %s261_s12, 4  ;;  %s26_s15 = sshll.u32 %s262_s14, 4  ;;  %s18_s13 = int_to_ptr.vmem [resolvable:$true] %s17_s13  ;;  %s289_s15 = int_to_ptr.vmem [resolvable:$true] %s26_s15 }
   0x4   :  { %s189_s18 = scalar_lea.hbm %s335_s0, 128 }
   0x5   :  { %p190_p0 = scmp.ne.s32.totalorder %s335_s0, %s189_s18  ;;  %p193_p1 = scmp.lt.u32.totalorder %s189_s18, %s335_s0 }
   0x7   :  { %p195_p2 = pnand %p193_p1, %p190_p0 }
   0x9   :  { %198 = shalt.err (!%p195_p2)
}
   0xa   :  { %s199_s23 = scalar_lea.vmem %s18_s13, 128  ;;  %p204_p4 = scmp.lt.s32.totalorder %s18_s13, %s18_s13 }
   0xb   :  { %p200_p3 = scmp.ne.s32.totalorder %s18_s13, %s199_s23  ;;  %p205_p5 = scmp.lt.s32.totalorder %s199_s23, %s199_s23 }
   0xd   :  { %p206_p6 = por %p205_p5, %p204_p4 }
   0xf   :  { %p207_p7 = pnand %p206_p6, %p200_p3 }
  0x11   :  { %210 = shalt.err (!%p207_p7)
}
  0x12   :  { %20 = dma.hbm_to_vmem [thread:$0]  %s335_s0, 128, %s18_s13, [#allocation3]  }
  0x13   :  { %s211_s28 = scalar_lea.hbm %s336_s1, 512 }
  0x14   :  { %p212_p8 = scmp.ne.s32.totalorder %s336_s1, %s211_s28  ;;  %p215_p9 = scmp.lt.u32.totalorder %s211_s28, %s336_s1 }
  0x16   :  { %p217_p10 = pnand %p215_p9, %p212_p8 }
  0x18   :  { %220 = shalt.err (!%p217_p10)
}
  0x19   :  { %s221_s6 = scalar_lea.vmem %s289_s15, 512  ;;  %p226_p12 = scmp.lt.s32.totalorder %s289_s15, %s289_s15 }
  0x1a   :  { %p222_p11 = scmp.ne.s32.totalorder %s289_s15, %s221_s6  ;;  %p227_p13 = scmp.lt.s32.totalorder %s221_s6, %s221_s6 }
  0x1c   :  { %p228_p0 = por %p227_p13, %p226_p12 }
  0x1e   :  { %p229_p1 = pnand %p228_p0, %p222_p11 }
  0x20   :  { %232 = shalt.err (!%p229_p1)
}
  0x21   :  { %s263_s0 = smov 128   ;;  %s264_s7 = smov 8  }
  0x22   :  { %32 = dma.hbm_to_vmem [thread:$0]  %s336_s1, 512, %s289_s15, [#allocation6], %s263_s0, %s263_s0, %s264_s7  }
  0x23   :  { %255 = dma.done.wait [#allocation3], 128  }
  0x24   :  { %256 = vsyncadd [#allocation3], 4294967168 }
  0x25   :  { %257 = dma.done.wait [#allocation6], 512  }
  0x26   :  { %258 = vsyncadd [#allocation6], 4294966784  ;;  %v265_v0 = vmov 0.0|0.0   ;;  %vm266_vm0 = vmmov 0   ;;  %v267_v1 = vmov 0.0   ;;  %v49_v2 = vld [vmem:[#allocation5] sm:$0xff] }
  0x27   :  { %171 = vmatprep.subr.bf16.mxu0 %v265_v0  ;;  %168 = vmatprep.mubr.msk.f32.mxu0 %vm266_vm0, %v267_v1  ;;  %v50_v3 = vld [vmem:[#allocation5 + $0x8] sm:$0xff]  ;;  %v51_v4 = vld [vmem:[#allocation5 + $0x10] sm:$0xff]  ;;  %v52_v6 = vld [vmem:[#allocation5 + $0x18] sm:$0xff]  ;;  %vm60_vm1 = vcmask 261120   ;;  %s268_s11 = smov [#allocation7]   ;;  %vm134_vm2 = vcmask 785408  }
  0x28   :  { %v172_v5 = vpack.c.bf16 %v50_v3, %v49_v2  ;;  %v41_v7 = vld [vmem:[#allocation2] sm:$0xff]  ;;  %v175_v9 = vpack.c.bf16 %v52_v6, %v51_v4  ;;  %s142_s12 = sshll.u32 %s268_s11, 4  ;;  %s143_s12 = int_to_ptr.vmem [resolvable:$true] %s142_s12 }
  0x29   :  { %v152_v8 = vmul.f32 -1.442695, %v41_v7  ;;  %v153_v14 = vld [vmem:[%s337_s2] ss:$0 sm:$0xff]  ;;  %s233_s13 = scalar_lea.vmem %s143_s12, 128  ;;  %p238_p3 = scmp.lt.s32.totalorder %s143_s12, %s143_s12 }
  0x2a   :  { %173 = vmatpush3.bf16.msra.mxu0 %v172_v5  ;;  %p234_p2 = scmp.ne.s32.totalorder %s143_s12, %s233_s13  ;;  %p239_p4 = scmp.lt.s32.totalorder %s233_s13, %s233_s13 }
  0x2b   :  { %174 = vmatprep.subr.bf16.mxu0 %v265_v0  ;;  %185 = vpow2.f32 %v152_v8 }
  0x2c   :  { %p240_p5 = por %p239_p4, %p238_p3 }
  0x2e   :  { %176 = vmatpush3.bf16.msra.mxu0 %v175_v9  ;;  %p241_p6 = pnand %p240_p5, %p234_p2 }
  0x35   :  { %v186_v10 = vpop.eup %185 }
  0x36   :  { %v45_v11 = vadd.f32 1.0, %v186_v10 }
  0x38   :  { %187 = vrcp.f32 %v45_v11 }
  0x42   :  { %v188_v12 = vpop.eup %187 }
  0x43   :  { %v48_v13 = vmul.f32 %v188_v12, %v41_v7 }
  0x45   :  { %169 = vmatmul.mubr.msk.f32.vlgmr.msra.gmra.mrb[0].mxu0 %vm60_vm1, %v48_v13 }
 0x118   :  { %v130_v15 = vpop.f32.mrb[0].mxu0 }
 0x119   :  { %v131_v16 = vadd.f32 %v153_v14, %v130_v15  ;;  %v170_v17 = vpop.f32.mrb[1].mxu0 }
 0x11b   :  { %135 = vst.msk [vmem:[#allocation7] sm:$0xff] %vm134_vm2, %v131_v16 }
 0x11c   :  { %244 = shalt.err (!%p241_p6)
}
 0x11d   :  { %s245_s16 = scalar_lea.hbm %s338_s3, 128 }
 0x11e   :  { %p246_p7 = scmp.ne.s32.totalorder %s338_s3, %s245_s16  ;;  %p249_p8 = scmp.lt.u32.totalorder %s245_s16, %s338_s3 }
 0x120   :  { %p251_p9 = pnand %p249_p8, %p246_p7 }
 0x122   :  { %254 = shalt.err (!%p251_p9)
}
 0x123   :  { %145 = dma.vmem_to_hbm [thread:$0]  %s143_s12, 128, %s338_s3, [#allocation4]  }
 0x124   :  { %259 = dma.done.wait [#allocation4], 128  }
 0x125   :  { %260 = vsyncadd [#allocation4], 4294967168 }
 0x126   :  { %149 = vsyncpa [#allocation3], 1 }
 0x127   :  { %150 = vsyncpa [#allocation6], 1 }
 0x128   :  { %151 = vsyncpa [#allocation4], 1 }

</bundles_post_ra>
